<compile_context>
chip_gen: v6e
topology: v6e:2x2x1
jax: 0.10.0
libtpu: 0.0.40
codegen_flags: <defaults>
</compile_context>

<pallas_src>
import functools
import math

import jax
import jax.numpy as jnp
from jax.experimental import pallas as pl
from jax.experimental.pallas import tpu as pltpu


def _attn_pool_kernel(x_ref, wq_ref, bq_ref, wk_ref, bk_ref, wv_ref, bv_ref,
                      o_ref, *, compute_dtype, use_slab):
    """One grid step processes a tile of BT batch elements.

    x_ref : (BT, S, E)  VMEM, compute dtype (cast in the wrapper)
    w*_ref: (E, E)      VMEM, compute dtype, PyTorch layout (out, in)
    b*_ref: (1, E)      VMEM, f32 (1/norm already folded into wq/bq)
    o_ref : (BT, E)     VMEM, output dtype (dense 2-D slab)
    """
    bt, s, e = x_ref.shape
    x3 = x_ref[...].astype(compute_dtype)                 # (BT,S,E)

    if use_slab:
        # S is sublane-aligned: collapse to one (BT*S, E) slab so each
        # projection feeds the MXU with BT*S rows (free reinterpretation).
        x2d = x3.reshape(bt * s, e)

        def proj(w_ref, b_ref):
            acc = jax.lax.dot_general(                     # x @ W.T, NT form
                x2d, w_ref[...],
                dimension_numbers=(((1,), (1,)), ((), ())),
                preferred_element_type=jnp.float32)
            return (acc + b_ref[...]).reshape(bt, s, e)    # (BT,S,E) f32
    else:
        # S not a multiple of the sublane packing: the slab collapse would
        # force a relayout copy every step, so run the projection as a
        # batched contraction with the (E,E) weight broadcast over BT.
        def proj(w_ref, b_ref):
            w_b = jnp.broadcast_to(w_ref[...][None, :, :], (bt, e, e))
            acc = jax.lax.dot_general(                     # 'bse,boe->bso'
                x3, w_b,
                dimension_numbers=(((2,), (2,)), ((0,), (0,))),
                preferred_element_type=jnp.float32)
            return acc + b_ref[...]                        # (BT,S,E) f32

    q = proj(wq_ref, bq_ref)          # 1/sqrt(E/h) already folded into wq/bq
    k = proj(wk_ref, bk_ref)

    q3 = q.astype(compute_dtype)
    k3 = k.astype(compute_dtype)

    # scores[b, s, t] = q[b, s, :] . k[b, t, :]
    scores = jax.lax.dot_general(
        q3, k3,
        dimension_numbers=(((2,), (2,)), ((0,), (0,))),
        preferred_element_type=jnp.float32)                # (BT,S,S)

    # Softmax over keys.
    m = jnp.max(scores, axis=-1, keepdims=True)
    p = jnp.exp(scores - m)
    denom = jnp.sum(p, axis=-1, keepdims=True)
    p = p * pl.reciprocal(denom, approx=True)              # EUP slot -> ~free

    # mean over queries first (rows sum to ~1), keep as (BT,1,S) for the MXU.
    p_mean = jnp.mean(p, axis=1, keepdims=True)            # (BT,1,S)
    rowsum = jnp.sum(p_mean, axis=-1)                      # (BT,1), ~1.0

    # Wv hoisted past the pooling:
    #   pooled = p_mean @ (x @ Wv^T + bv) = (p_mean @ x) @ Wv^T + rowsum * bv
    ctx = jax.lax.dot_general(                             # 'bqs,bse->bqe'
        p_mean.astype(compute_dtype), x3,
        dimension_numbers=(((2,), (1,)), ((0,), (0,))),
        preferred_element_type=jnp.float32)                # (BT,1,E)
    ctx2 = ctx.reshape(bt, e).astype(compute_dtype)        # tiny relayout

    pooled = jax.lax.dot_general(                          # ctx @ Wv^T (NT)
        ctx2, wv_ref[...],
        dimension_numbers=(((1,), (1,)), ((), ())),
        preferred_element_type=jnp.float32)                # (BT,E)
    pooled = pooled + rowsum * bv_ref[...]

    o_ref[...] = pooled.astype(o_ref.dtype)


def _tpu_generation_info():
    """Best-effort (num_tensorcores, vmem_limit_bytes) for the local TPU."""
    kind = ""
    try:
        kind = jax.devices()[0].device_kind.lower()
    except Exception:
        pass
    is_v7 = "v7" in kind
    num_tc = 2 if is_v7 else 1
    vmem_capacity = (64 if is_v7 else 128) * 1024 * 1024
    try:
        info = pltpu.get_tpu_info()
        vmem_capacity = int(getattr(info, "vmem_capacity_bytes", vmem_capacity))
    except Exception:
        pass
    # ~3/4 of physical VMEM, leaving headroom for Mosaic internal scratch:
    # ≈48 MiB on v7x (64 MiB/TC), ≈96 MiB on v5e/v6e (128 MiB).
    vmem_limit = max(32 * 1024 * 1024,
                     min(vmem_capacity * 3 // 4, 100 * 1024 * 1024))
    return num_tc, vmem_limit


def _pick_batch_tile(B, S, E, *, x_itemsize, compute_itemsize, out_itemsize,
                     num_tensorcores, vmem_limit_bytes, single_buffer_weights,
                     use_slab):
    # With E <= 256 the contraction dim cannot fill a 256-wide MXU, so rows
    # per projection are the occupancy lever: aim for >= 512 rows.
    bt = min(B, max(1, pl.cdiv(512, S)))

    # Rough VMEM cap per batch element: double-buffered x tile + f32 q/k +
    # compute-dtype casts + (S,S) scores/probs + output, with the weights
    # (single- or double-buffered) and a few MiB of headroom subtracted.
    wbuf = 1 if single_buffer_weights else 2
    weight_bytes = wbuf * (3 * E * E * compute_itemsize + 3 * E * 4)
    per_elem = (S * E * (2 * x_itemsize + 2 * 4 + 3 * compute_itemsize)
                + 8 * S * S + 2 * E * out_itemsize + 4 * E)
    if not use_slab:
        per_elem += E * E * compute_itemsize  # broadcast-weight fallback path
    budget = vmem_limit_bytes - weight_bytes - 4 * 1024 * 1024
    if budget > 0:
        bt = max(1, min(bt, budget // per_elem))
    else:
        bt = 1

    # Only v7x has 2 TensorCores: give its "parallel" grid axis >= 2 steps.
    # On v5e/v6e keep one big tile (splitting just halves MXU rows/step).
    if num_tensorcores >= 2 and B > 1 and bt >= B:
        bt = pl.cdiv(B, 2)

    # Output block is a dense (bt, E) slab: its sublane dim must be a multiple
    # of the packing tile (or equal B) for legal, unmasked stores.
    out_sub = 8 * max(1, 4 // out_itemsize)
    if bt < B and bt % out_sub != 0:
        bt = min(B, max(out_sub, (bt // out_sub) * out_sub))
    return int(max(1, min(bt, B)))


def attention_pooling(x, wq, bq, wk, bk, wv, bv, n_heads=1, *,
                      batch_tile=None, compute_dtype=jnp.bfloat16):
    """x: (B, S, E); w*: (E, E) PyTorch-layout Linear weights; b*: (E,)."""
    B, S, E = x.shape
    out_dtype = x.dtype
    compute_dtype = jnp.dtype(compute_dtype)
    cb = compute_dtype.itemsize
    inv_norm = 1.0 / math.sqrt(E / n_heads)          # host math, no round-trip

    # Feed x in the MXU compute dtype: halves HBM->VMEM DMA bytes and the
    # double-buffered x tile when compute_dtype is bf16.
    x_in = x if x.dtype == compute_dtype else x.astype(compute_dtype)
    xb = x_in.dtype.itemsize

    # (BT,S,E)->(BT*S,E) is a free reinterpretation only when S is a multiple
    # of the sublane packing of the x tile (8 for f32, 16 for bf16).
    sublane = 8 * max(1, 4 // xb)
    use_slab = (S % sublane == 0)

    num_tc, vmem_limit = _tpu_generation_info()

    # One-time weight prep (in production, pre-compute outside the jit):
    # keep PyTorch (out,in) layout, fold 1/sqrt(E/h) into Wq/bq, cast to the
    # MXU compute dtype.
    wq_c = (wq * inv_norm).astype(compute_dtype)
    wk_c = wk.astype(compute_dtype)
    wv_c = wv.astype(compute_dtype)
    bq2 = (bq * inv_norm).reshape(1, E).astype(jnp.float32)
    bk2 = bk.reshape(1, E).astype(jnp.float32)
    bv2 = bv.reshape(1, E).astype(jnp.float32)

    # Grid-invariant weights: single-buffer them once they are big enough to
    # matter (default double-buffering doubles their VMEM footprint; at E~2K
    # bf16 that decides whether they fit v7x's 64 MiB VMEM at all).
    raw_weight_bytes = 3 * E * E * cb + 3 * E * 4
    single_buffer_weights = raw_weight_bytes >= 4 * 1024 * 1024

    if batch_tile is None:
        batch_tile = _pick_batch_tile(
            B, S, E, x_itemsize=xb, compute_itemsize=cb,
            out_itemsize=jnp.dtype(out_dtype).itemsize,
            num_tensorcores=num_tc, vmem_limit_bytes=vmem_limit,
            single_buffer_weights=single_buffer_weights, use_slab=use_slab)
    grid_b = pl.cdiv(B, batch_tile)

    if single_buffer_weights:
        w_spec = pl.BlockSpec((E, E), lambda b: (0, 0),
                              pipeline_mode=pl.Buffered(1))
        b_spec = pl.BlockSpec((1, E), lambda b: (0, 0),
                              pipeline_mode=pl.Buffered(1))
    else:
        w_spec = pl.BlockSpec((E, E), lambda b: (0, 0))
        b_spec = pl.BlockSpec((1, E), lambda b: (0, 0))

    kernel = functools.partial(_attn_pool_kernel,
                               compute_dtype=compute_dtype, use_slab=use_slab)

    out2d = pl.pallas_call(
        kernel,
        out_shape=jax.ShapeDtypeStruct((B, E), out_dtype),
        grid_spec=pltpu.PrefetchScalarGridSpec(
            num_scalar_prefetch=0,
            grid=(grid_b,),
            in_specs=[
                pl.BlockSpec((batch_tile, S, E), lambda b: (b, 0, 0)),  # x
                w_spec, b_spec,                                         # q
                w_spec, b_spec,                                         # k
                w_spec, b_spec,                                         # v
            ],
            out_specs=pl.BlockSpec((batch_tile, E), lambda b: (b, 0)),
        ),
        compiler_params=pltpu.CompilerParams(
            dimension_semantics=("parallel",),
            vmem_limit_bytes=vmem_limit),
    )(x_in, wq_c, bq2, wk_c, bk2, wv_c, bv2)

    return out2d.reshape(B, 1, E)


def attention_pooling_ref(x, wq, bq, wk, bk, wv, bv, n_heads=1):
    """Pure-JAX reference replicating the PyTorch forward."""
    E = x.shape[-1]
    norm = math.sqrt(E / n_heads)
    q = x @ wq.T + bq
    k = x @ wk.T + bk
    v = x @ wv.T + bv
    scores = jnp.einsum('bse,bte->bst', q, k) / norm
    attn = jax.nn.softmax(scores, axis=-1)
    pooled = jnp.einsum('bst,bte->bse', attn, v)
    return pooled.mean(axis=1, keepdims=True)


if __name__ == "__main__":
    B, S, E = 4, 8, 128
    key = jax.random.PRNGKey(0)
    kx, kq, kbq, kk, kbk, kv, kbv = jax.random.split(key, 7)

    x = jax.random.normal(kx, (B, S, E), dtype=jnp.float32)
    # PyTorch-layout Linear params: W is (out, in), b is (out,)
    wq = jax.random.normal(kq, (E, E), dtype=jnp.float32) * 0.1
    bq = jax.random.normal(kbq, (E,), dtype=jnp.float32) * 0.1
    wk = jax.random.normal(kk, (E, E), dtype=jnp.float32) * 0.1
    bk = jax.random.normal(kbk, (E,), dtype=jnp.float32) * 0.1
    wv = jax.random.normal(kv, (E, E), dtype=jnp.float32) * 0.1
    bv = jax.random.normal(kbv, (E,), dtype=jnp.float32) * 0.1

    ref = attention_pooling_ref(x, wq, bq, wk, bk, wv, bv)

    # Exact-ish mode: f32 MXU operands (only the approx softmax recip differs).
    out_f32 = jax.block_until_ready(
        attention_pooling(x, wq, bq, wk, bk, wv, bv, compute_dtype=jnp.float32))
    assert out_f32.shape == (B, 1, E)
    assert jnp.allclose(out_f32, ref, atol=3e-3, rtol=3e-3), (
        f"f32 max abs diff {jnp.max(jnp.abs(out_f32 - ref))}")

    # Default fast path: bf16 MXU operands, f32 accumulation.
    out_bf16 = jax.block_until_ready(
        attention_pooling(x, wq, bq, wk, bk, wv, bv))
    assert out_bf16.shape == (B, 1, E)
    assert jnp.allclose(out_bf16, ref, atol=6e-2, rtol=6e-2), (
        f"bf16 max abs diff {jnp.max(jnp.abs(out_bf16 - ref))}")

    print("KERNEL_OK")
</pallas_src>

<mosaic_0001>
module attributes {stable_mosaic.version = 11 : i64} {
  func.func @_attn_pool_kernel(%arg0: i32, %arg1: memref<4x8x128xf32, #tpu.memory_space<vmem>>, %arg2: memref<128x128xf32, #tpu.memory_space<vmem>>, %arg3: memref<1x128xf32, #tpu.memory_space<vmem>>, %arg4: memref<128x128xf32, #tpu.memory_space<vmem>>, %arg5: memref<1x128xf32, #tpu.memory_space<vmem>>, %arg6: memref<128x128xf32, #tpu.memory_space<vmem>>, %arg7: memref<1x128xf32, #tpu.memory_space<vmem>>, %arg8: memref<4x128xf32, #tpu.memory_space<vmem>>) attributes {dimension_semantics = [#tpu.dimension_semantics<parallel>], iteration_bounds = array<i64: 1>, scalar_prefetch = 0 : i64, scratch_operands = 0 : i64, tpu.core_type = #tpu.core_type<tc>, window_params = [{transform_indices = @transform_0, window_bounds = array<i64: 4, 8, 128>}, {pipeline_mode = #tpu.pipeline_mode<synchronous>, transform_indices = @transform_1, window_bounds = array<i64: 128, 128>}, {pipeline_mode = #tpu.pipeline_mode<synchronous>, transform_indices = @transform_2, window_bounds = array<i64: 1, 128>}, {pipeline_mode = #tpu.pipeline_mode<synchronous>, transform_indices = @transform_3, window_bounds = array<i64: 128, 128>}, {pipeline_mode = #tpu.pipeline_mode<synchronous>, transform_indices = @transform_4, window_bounds = array<i64: 1, 128>}, {pipeline_mode = #tpu.pipeline_mode<synchronous>, transform_indices = @transform_5, window_bounds = array<i64: 128, 128>}, {pipeline_mode = #tpu.pipeline_mode<synchronous>, transform_indices = @transform_6, window_bounds = array<i64: 1, 128>}, {transform_indices = @transform_7, window_bounds = array<i64: 4, 128>}]} {
    %c0 = arith.constant 0 : index
    %c0_0 = arith.constant 0 : index
    %c0_1 = arith.constant 0 : index
    %0 = vector.load %arg1[%c0, %c0_0, %c0_1] : memref<4x8x128xf32, #tpu.memory_space<vmem>>, vector<4x8x128xf32>
    %1 = vector.shape_cast %0 : vector<4x8x128xf32> to vector<32x128xf32>
    %c0_2 = arith.constant 0 : index
    %c0_3 = arith.constant 0 : index
    %2 = vector.load %arg2[%c0_2, %c0_3] : memref<128x128xf32, #tpu.memory_space<vmem>>, vector<128x128xf32>
    %cst = arith.constant dense<0.000000e+00> : vector<32x128xf32>
    %3 = tpu.matmul %1, %2, %cst {dimension_numbers = #tpu.dot_dimension_numbers<[1], [1], [0], [0], [0, 0, 1, 0], [], []>} : vector<32x128xf32>, vector<128x128xf32>, vector<32x128xf32> -> vector<32x128xf32>
    %c0_4 = arith.constant 0 : index
    %c0_5 = arith.constant 0 : index
    %4 = vector.load %arg3[%c0_4, %c0_5] : memref<1x128xf32, #tpu.memory_space<vmem>>, vector<1x128xf32>
    %5 = vector.broadcast %4 : vector<1x128xf32> to vector<32x128xf32>
    %6 = arith.addf %3, %5 : vector<32x128xf32>
    %7 = vector.shape_cast %6 : vector<32x128xf32> to vector<4x8x128xf32>
    %c0_6 = arith.constant 0 : index
    %c0_7 = arith.constant 0 : index
    %8 = vector.load %arg4[%c0_6, %c0_7] : memref<128x128xf32, #tpu.memory_space<vmem>>, vector<128x128xf32>
    %cst_8 = arith.constant dense<0.000000e+00> : vector<32x128xf32>
    %9 = tpu.matmul %1, %8, %cst_8 {dimension_numbers = #tpu.dot_dimension_numbers<[1], [1], [0], [0], [0, 0, 1, 0], [], []>} : vector<32x128xf32>, vector<128x128xf32>, vector<32x128xf32> -> vector<32x128xf32>
    %c0_9 = arith.constant 0 : index
    %c0_10 = arith.constant 0 : index
    %10 = vector.load %arg5[%c0_9, %c0_10] : memref<1x128xf32, #tpu.memory_space<vmem>>, vector<1x128xf32>
    %11 = vector.broadcast %10 : vector<1x128xf32> to vector<32x128xf32>
    %12 = arith.addf %9, %11 : vector<32x128xf32>
    %13 = vector.shape_cast %12 : vector<32x128xf32> to vector<4x8x128xf32>
    %cst_11 = arith.constant dense<0.000000e+00> : vector<4x8x8xf32>
    %14 = tpu.matmul %7, %13, %cst_11 {dimension_numbers = #tpu.dot_dimension_numbers<[2], [2], [1], [1], [0, 0, 0, 1, 1, 1], [0], [0]>} : vector<4x8x128xf32>, vector<4x8x128xf32>, vector<4x8x8xf32> -> vector<4x8x8xf32>
    %cst_12 = arith.constant dense<0xFF800000> : vector<4x8xf32>
    %15 = vector.multi_reduction <maximumf>, %14, %cst_12 [2] : vector<4x8x8xf32> to vector<4x8xf32>
    %16 = vector.shape_cast %15 : vector<4x8xf32> to vector<4x8x1xf32>
    %17 = vector.broadcast %16 : vector<4x8x1xf32> to vector<4x8x8xf32>
    %18 = arith.subf %14, %17 : vector<4x8x8xf32>
    %19 = math.exp %18 : vector<4x8x8xf32>
    %cst_13 = arith.constant dense<0.000000e+00> : vector<4x8xf32>
    %20 = vector.multi_reduction <add>, %19, %cst_13 [2] : vector<4x8x8xf32> to vector<4x8xf32>
    %21 = vector.shape_cast %20 : vector<4x8xf32> to vector<4x8x1xf32>
    %22 = tpu.reciprocal %21 {approx = true} : vector<4x8x1xf32> -> vector<4x8x1xf32>
    %23 = vector.broadcast %22 : vector<4x8x1xf32> to vector<4x8x8xf32>
    %24 = arith.mulf %19, %23 : vector<4x8x8xf32>
    %cst_14 = arith.constant dense<0.000000e+00> : vector<4x8xf32>
    %25 = vector.multi_reduction <add>, %24, %cst_14 [1] : vector<4x8x8xf32> to vector<4x8xf32>
    %26 = vector.shape_cast %25 : vector<4x8xf32> to vector<4x1x8xf32>
    %cst_15 = arith.constant 8.000000e+00 : f32
    %27 = vector.broadcast %cst_15 : f32 to vector<4x1x8xf32>
    %28 = arith.divf %26, %27 : vector<4x1x8xf32>
    %cst_16 = arith.constant dense<0.000000e+00> : vector<4x1xf32>
    %29 = vector.multi_reduction <add>, %28, %cst_16 [2] : vector<4x1x8xf32> to vector<4x1xf32>
    %cst_17 = arith.constant dense<0.000000e+00> : vector<4x1x128xf32>
    %30 = tpu.matmul %28, %0, %cst_17 {dimension_numbers = #tpu.dot_dimension_numbers<[2], [1], [1], [2], [0, 0, 0, 1, 1, 2], [0], [0]>} : vector<4x1x8xf32>, vector<4x8x128xf32>, vector<4x1x128xf32> -> vector<4x1x128xf32>
    %31 = vector.shape_cast %30 : vector<4x1x128xf32> to vector<4x128xf32>
    %c0_18 = arith.constant 0 : index
    %c0_19 = arith.constant 0 : index
    %32 = vector.load %arg6[%c0_18, %c0_19] : memref<128x128xf32, #tpu.memory_space<vmem>>, vector<128x128xf32>
    %cst_20 = arith.constant dense<0.000000e+00> : vector<4x128xf32>
    %33 = tpu.matmul %31, %32, %cst_20 {dimension_numbers = #tpu.dot_dimension_numbers<[1], [1], [0], [0], [0, 0, 1, 0], [], []>} : vector<4x128xf32>, vector<128x128xf32>, vector<4x128xf32> -> vector<4x128xf32>
    %c0_21 = arith.constant 0 : index
    %c0_22 = arith.constant 0 : index
    %34 = vector.load %arg7[%c0_21, %c0_22] : memref<1x128xf32, #tpu.memory_space<vmem>>, vector<1x128xf32>
    %35 = vector.broadcast %29 : vector<4x1xf32> to vector<4x128xf32>
    %36 = vector.broadcast %34 : vector<1x128xf32> to vector<4x128xf32>
    %37 = arith.mulf %35, %36 : vector<4x128xf32>
    %38 = arith.addf %33, %37 : vector<4x128xf32>
    %c0_23 = arith.constant 0 : index
    %c0_24 = arith.constant 0 : index
    %39 = vector.load %arg8[%c0_23, %c0_24] : memref<4x128xf32, #tpu.memory_space<vmem>>, vector<4x128xf32>
    tpu.vector_store %arg8[%c0_23, %c0_24], %38 {strides = array<i32>} : memref<4x128xf32, #tpu.memory_space<vmem>>, vector<4x128xf32>,
    return
  }
  func.func @transform_0(%arg0: i32) -> (i32, i32, i32) {
    %c0_i32 = arith.constant 0 : i32
    %c0_i32_0 = arith.constant 0 : i32
    %c0_i32_1 = arith.constant 0 : i32
    return %arg0, %c0_i32, %c0_i32_0 : i32, i32, i32
  }
  func.func @transform_1(%arg0: i32) -> (i32, i32) {
    %c0_i32 = arith.constant 0 : i32
    %c0_i32_0 = arith.constant 0 : i32
    %c0_i32_1 = arith.constant 0 : i32
    return %c0_i32, %c0_i32_0 : i32, i32
  }
  func.func @transform_2(%arg0: i32) -> (i32, i32) {
    %c0_i32 = arith.constant 0 : i32
    %c0_i32_0 = arith.constant 0 : i32
    %c0_i32_1 = arith.constant 0 : i32
    return %c0_i32, %c0_i32_0 : i32, i32
  }
  func.func @transform_3(%arg0: i32) -> (i32, i32) {
    %c0_i32 = arith.constant 0 : i32
    %c0_i32_0 = arith.constant 0 : i32
    %c0_i32_1 = arith.constant 0 : i32
    return %c0_i32, %c0_i32_0 : i32, i32
  }
  func.func @transform_4(%arg0: i32) -> (i32, i32) {
    %c0_i32 = arith.constant 0 : i32
    %c0_i32_0 = arith.constant 0 : i32
    %c0_i32_1 = arith.constant 0 : i32
    return %c0_i32, %c0_i32_0 : i32, i32
  }
  func.func @transform_5(%arg0: i32) -> (i32, i32) {
    %c0_i32 = arith.constant 0 : i32
    %c0_i32_0 = arith.constant 0 : i32
    %c0_i32_1 = arith.constant 0 : i32
    return %c0_i32, %c0_i32_0 : i32, i32
  }
  func.func @transform_6(%arg0: i32) -> (i32, i32) {
    %c0_i32 = arith.constant 0 : i32
    %c0_i32_0 = arith.constant 0 : i32
    %c0_i32_1 = arith.constant 0 : i32
    return %c0_i32, %c0_i32_0 : i32, i32
  }
  func.func @transform_7(%arg0: i32) -> (i32, i32) {
    %c0_i32 = arith.constant 0 : i32
    %c0_i32_0 = arith.constant 0 : i32
    return %arg0, %c0_i32 : i32, i32
  }
}

</mosaic_0001>

<bundles_post_ra>
// kernel: tpu_custom_call.1
= control target key start
LH: loop header
LB: loop body
LE: loop exit
PB: predicated region body
PF: predicated region fallthrough
CT: control target
= control target key end

     0   :  { %12 = vsyncpa [#allocation3], 0  ;;  %s2707_s0 = inlined_call_operand.hbm [shape: f32[4,8,128], index: 0, kind: input, shape index: {}]   ;;  %s2708_s1 = inlined_call_operand.hbm [shape: f32[128,128], index: 1, kind: input, shape index: {}]   ;;  %s2709_s2 = inlined_call_operand.vmem [shape: f32[1,128], index: 2, kind: input, shape index: {}]   ;;  %s2710_s3 = inlined_call_operand.hbm [shape: f32[128,128], index: 3, kind: input, shape index: {}]   ;;  %s2711_s4 = inlined_call_operand.vmem [shape: f32[1,128], index: 4, kind: input, shape index: {}]   ;;  %s2712_s5 = inlined_call_operand.hbm [shape: f32[128,128], index: 5, kind: input, shape index: {}]   ;;  %s2713_s6 = inlined_call_operand.vmem [shape: f32[1,128], index: 6, kind: input, shape index: {}]   ;;  %s2714_s7 = inlined_call_operand.hbm [shape: f32[4,128], index: 7, kind: output, shape index: {}]  }
   0x1   :  { %13 = vsyncpa [#allocation6], 0 }
   0x2   :  { %14 = vsyncpa [#allocation9], 0 }
   0x3   :  { %15 = vsyncpa [#allocation4], 0  ;;  %s2206_s24 = smov [#allocation5]   ;;  %s2207_s26 = smov [#allocation2]  }
   0x4   :  { %s33_s25 = sshll.u32 %s2206_s24, 4  ;;  %s21_s27 = sshll.u32 %s2207_s26, 4  ;;  %s34_s25 = int_to_ptr.vmem [resolvable:$true] %s33_s25  ;;  %s22_s27 = int_to_ptr.vmem [resolvable:$true] %s21_s27 }
   0x5   :  { %s2106_s28 = scalar_lea.vmem %s34_s25, 2048  ;;  %p2111_p1 = scmp.lt.s32.totalorder %s34_s25, %s34_s25 }
   0x6   :  { %p2107_p0 = scmp.ne.s32.totalorder %s34_s25, %s2106_s28  ;;  %p2112_p2 = scmp.lt.s32.totalorder %s2106_s28, %s2106_s28 }
   0x8   :  { %p2113_p3 = por %p2112_p2, %p2111_p1 }
   0xa   :  { %p2114_p4 = pnand %p2113_p3, %p2107_p0 }
   0xc   :  { %2117 = shalt.err (!%p2114_p4)
}
   0xd   :  { %s2208_s29 = smov 128   ;;  %s2209_s30 = smov 8  }
   0xe   :  { %39 = dma.hbm_to_vmem [thread:$0]  %s2708_s1, 2048, %s34_s25, [#allocation6], %s2208_s29, %s2208_s29, %s2209_s30  }
   0xf   :  { %s2126_s10 = scalar_lea.vmem %s22_s27, 512  ;;  %p2131_p6 = scmp.lt.s32.totalorder %s22_s27, %s22_s27 }
  0x10   :  { %p2127_p5 = scmp.ne.s32.totalorder %s22_s27, %s2126_s10  ;;  %p2132_p7 = scmp.lt.s32.totalorder %s2126_s10, %s2126_s10 }
  0x12   :  { %p2133_p8 = por %p2132_p7, %p2131_p6 }
  0x14   :  { %p2134_p9 = pnand %p2133_p8, %p2127_p5 }
  0x16   :  { %2137 = shalt.err (!%p2134_p9)
}
  0x17   :  { %27 = dma.hbm_to_vmem [thread:$0]  %s2707_s0, 512, %s22_s27, [#allocation3], %s2208_s29, %s2208_s29, %s2209_s30  }
  0x18   :  { %s2210_s13 = smov [#allocation7]   ;;  %s2211_s15 = smov [#allocation8]  }
  0x19   :  { %s47_s14 = sshll.u32 %s2210_s13, 4  ;;  %s61_s16 = sshll.u32 %s2211_s15, 4  ;;  %s48_s14 = int_to_ptr.vmem [resolvable:$true] %s47_s14  ;;  %s62_s16 = int_to_ptr.vmem [resolvable:$true] %s61_s16 }
  0x1a   :  { %s2146_s1 = scalar_lea.vmem %s48_s14, 2048  ;;  %p2151_p11 = scmp.lt.s32.totalorder %s48_s14, %s48_s14 }
  0x1b   :  { %p2147_p10 = scmp.ne.s32.totalorder %s48_s14, %s2146_s1  ;;  %p2152_p12 = scmp.lt.s32.totalorder %s2146_s1, %s2146_s1 }
  0x1d   :  { %p2153_p13 = por %p2152_p12, %p2151_p11 }
  0x1f   :  { %p2154_p0 = pnand %p2153_p13, %p2147_p10 }
  0x21   :  { %2157 = shalt.err (!%p2154_p0)
}
  0x22   :  { %53 = dma.hbm_to_vmem [thread:$0]  %s2710_s3, 2048, %s48_s14, [#allocation6], %s2208_s29, %s2208_s29, %s2209_s30  }
  0x23   :  { %s2166_s0 = scalar_lea.vmem %s62_s16, 2048  ;;  %p2171_p2 = scmp.lt.s32.totalorder %s62_s16, %s62_s16 }
  0x24   :  { %p2167_p1 = scmp.ne.s32.totalorder %s62_s16, %s2166_s0  ;;  %p2172_p3 = scmp.lt.s32.totalorder %s2166_s0, %s2166_s0 }
  0x26   :  { %p2173_p4 = por %p2172_p3, %p2171_p2 }
  0x28   :  { %p2174_p5 = pnand %p2173_p4, %p2167_p1 }
  0x2a   :  { %2177 = shalt.err (!%p2174_p5)
}
  0x2b   :  { %67 = dma.hbm_to_vmem [thread:$0]  %s2712_s5, 2048, %s62_s16, [#allocation9], %s2208_s29, %s2208_s29, %s2209_s30  }
  0x2c   :  { %2198 = dma.done.wait [#allocation3], 512  }
  0x2d   :  { %2199 = vsyncadd [#allocation3], 4294966784 }
  0x2e   :  { %2200 = dma.done.wait [#allocation6], 4096  }
  0x2f   :  { %2201 = vsyncadd [#allocation6], 4294963200 }
  0x30   :  { %2202 = dma.done.wait [#allocation9], 2048  }
  0x31   :  { %2203 = vsyncadd [#allocation9], 4294965248  ;;  %v209_v0 = vld [vmem:[#allocation7 + $0x78] sm:$0xff]  ;;  %v208_v2 = vld [vmem:[#allocation7 + $0x70] sm:$0xff]  ;;  %v2212_v36 = vmov 0.0   ;;  %vm2213_vm0 = vmmov 0  }
  0x32   :  { %v101_v1 = vld [vmem:[#allocation5 + $0x78] sm:$0xff]  ;;  %1957 = vmatprep.subr.mxu1 %v209_v0  ;;  %v100_v3 = vld [vmem:[#allocation5 + $0x70] sm:$0xff]  ;;  %v207_v4 = vld [vmem:[#allocation7 + $0x68] sm:$0xff]  ;;  %vm582_vm1 = vcmask 64512   ;;  %vm1134_vm2 = vcmask 1041409   ;;  %vm2716_vm3 = vcmask 1042434  }
  0x33   :  { %1919 = vmatprep.subr.mxu0 %v101_v1  ;;  %1958 = vmatpush3.xpose.msra.mxu1 %v209_v0  ;;  %v99_v5 = vld [vmem:[#allocation5 + $0x68] sm:$0xff]  ;;  %v206_v6 = vld [vmem:[#allocation7 + $0x60] sm:$0xff]  ;;  %v205_v9 = vld [vmem:[#allocation7 + $0x58] sm:$0xff]  ;;  %vm2715_vm4 = vcmask 1043459   ;;  %vm1410_vm5 = vcmask 130112   ;;  %vm1417_vm6 = vcmask 195712  }
  0x34   :  { %1920 = vmatpush3.xpose.msra.mxu0 %v101_v1  ;;  %1959 = vmatprep.subr.mxu1 %v208_v2  ;;  %v98_v7 = vld [vmem:[#allocation5 + $0x60] sm:$0xff]  ;;  %v97_v10 = vld [vmem:[#allocation5 + $0x58] sm:$0xff]  ;;  %v204_v11 = vld [vmem:[#allocation7 + $0x50] sm:$0xff]  ;;  %vm1424_vm7 = vcmask 261312   ;;  %vm1431_vm8 = vcmask 326912   ;;  %vm1438_vm9 = vcmask 392512  }
  0x35   :  { %1921 = vmatprep.subr.mxu0 %v100_v3  ;;  %v2280_v8 = vld [vmem:[#allocation2] sm:$0xff]  ;;  %v96_v12 = vld [vmem:[#allocation5 + $0x50] sm:$0xff]  ;;  %v203_v13 = vld [vmem:[#allocation7 + $0x48] sm:$0xff]  ;;  %vm1445_vm10 = vcmask 458112   ;;  %vm1452_vm11 = vcmask 523712   ;;  %vm1459_vm12 = vcmask 589312  }
  0x36   :  { %1989 = vmatprep.mubr.f32.mxu1 %v2280_v8  ;;  %1951 = vmatprep.mubr.f32.mxu0 %v2280_v8  ;;  %v95_v14 = vld [vmem:[#allocation5 + $0x48] sm:$0xff]  ;;  %v202_v15 = vld [vmem:[#allocation7 + $0x40] sm:$0xff]  ;;  %v201_v17 = vld [vmem:[#allocation7 + $0x38] sm:$0xff]  ;;  %vm1466_vm13 = vcmask 654912   ;;  %vm1473_vm14 = vcmask 720512   ;;  %vm1480_vm15 = vcmask 786112  }
  0x37   :  { %1960 = vmatpush3.xpose.msra.mxu1 %v208_v2  ;;  %v94_v16 = vld [vmem:[#allocation5 + $0x40] sm:$0xff]  ;;  %v93_v18 = vld [vmem:[#allocation5 + $0x38] sm:$0xff]  ;;  %v200_v19 = vld [vmem:[#allocation7 + $0x30] sm:$0xff] }
  0x38   :  { %1922 = vmatpush3.xpose.msra.mxu0 %v100_v3  ;;  %1961 = vmatprep.subr.mxu1 %v207_v4  ;;  %v92_v20 = vld [vmem:[#allocation5 + $0x30] sm:$0xff]  ;;  %v199_v21 = vld [vmem:[#allocation7 + $0x28] sm:$0xff]  ;;  %v198_v23 = vld [vmem:[#allocation7 + $0x20] sm:$0xff] }
  0x39   :  { %1923 = vmatprep.subr.mxu0 %v99_v5  ;;  %v91_v22 = vld [vmem:[#allocation5 + $0x28] sm:$0xff]  ;;  %v90_v24 = vld [vmem:[#allocation5 + $0x20] sm:$0xff]  ;;  %v197_v25 = vld [vmem:[#allocation7 + $0x18] sm:$0xff] }
  0x3a   :  { %v89_v26 = vld [vmem:[#allocation5 + $0x18] sm:$0xff]  ;;  %v196_v27 = vld [vmem:[#allocation7 + $0x10] sm:$0xff]  ;;  %v195_v29 = vld [vmem:[#allocation7 + $0x8] sm:$0xff] }
  0x3b   :  { %1962 = vmatpush3.xpose.msra.mxu1 %v207_v4  ;;  %v88_v28 = vld [vmem:[#allocation5 + $0x10] sm:$0xff]  ;;  %v87_v30 = vld [vmem:[#allocation5 + $0x8] sm:$0xff]  ;;  %v194_v31 = vld [vmem:[#allocation7] sm:$0xff] }
  0x3c   :  { %1924 = vmatpush3.xpose.msra.mxu0 %v99_v5  ;;  %1963 = vmatprep.subr.mxu1 %v206_v6  ;;  %v86_v32 = vld [vmem:[#allocation5] sm:$0xff]  ;;  %v2284_v33 = vld [vmem:[#allocation2 + $0x8] sm:$0xff]  ;;  %v2286_v34 = vld [vmem:[#allocation2 + $0x10] sm:$0xff] }
  0x3d   :  { %1925 = vmatprep.subr.mxu0 %v98_v7  ;;  %v2291_v35 = vld [vmem:[#allocation2 + $0x18] sm:$0xff]  ;;  %v1840_v39 = vld [vmem:[%s2711_s4] ss:$0 sm:$0xff] }
  0x3e   :  { %v1839_v42 = vld [vmem:[%s2709_s2] ss:$0 sm:$0xff] }
  0x3f   :  { %1964 = vmatpush3.xpose.msra.mxu1 %v206_v6 }
  0x40   :  { %1926 = vmatpush3.xpose.msra.mxu0 %v98_v7  ;;  %1965 = vmatprep.subr.mxu1 %v205_v9 }
  0x41   :  { %1927 = vmatprep.subr.mxu0 %v97_v10 }
  0x43   :  { %1966 = vmatpush3.xpose.msra.mxu1 %v205_v9 }
  0x44   :  { %1928 = vmatpush3.xpose.msra.mxu0 %v97_v10  ;;  %1967 = vmatprep.subr.mxu1 %v204_v11 }
  0x45   :  { %1929 = vmatprep.subr.mxu0 %v96_v12 }
  0x47   :  { %1968 = vmatpush3.xpose.msra.mxu1 %v204_v11 }
  0x48   :  { %1930 = vmatpush3.xpose.msra.mxu0 %v96_v12  ;;  %1969 = vmatprep.subr.mxu1 %v203_v13 }
  0x49   :  { %1931 = vmatprep.subr.mxu0 %v95_v14 }
  0x4b   :  { %1970 = vmatpush3.xpose.msra.mxu1 %v203_v13 }
  0x4c   :  { %1932 = vmatpush3.xpose.msra.mxu0 %v95_v14  ;;  %1971 = vmatprep.subr.mxu1 %v202_v15 }
  0x4d   :  { %1933 = vmatprep.subr.mxu0 %v94_v16 }
  0x4f   :  { %1972 = vmatpush3.xpose.msra.mxu1 %v202_v15 }
  0x50   :  { %1934 = vmatpush3.xpose.msra.mxu0 %v94_v16  ;;  %1973 = vmatprep.subr.mxu1 %v201_v17 }
  0x51   :  { %1935 = vmatprep.subr.mxu0 %v93_v18 }
  0x53   :  { %1974 = vmatpush3.xpose.msra.mxu1 %v201_v17 }
  0x54   :  { %1936 = vmatpush3.xpose.msra.mxu0 %v93_v18  ;;  %1975 = vmatprep.subr.mxu1 %v200_v19 }
  0x55   :  { %1937 = vmatprep.subr.mxu0 %v92_v20 }
  0x57   :  { %1976 = vmatpush3.xpose.msra.mxu1 %v200_v19 }
  0x58   :  { %1938 = vmatpush3.xpose.msra.mxu0 %v92_v20  ;;  %1977 = vmatprep.subr.mxu1 %v199_v21 }
  0x59   :  { %1939 = vmatprep.subr.mxu0 %v91_v22 }
  0x5b   :  { %1978 = vmatpush3.xpose.msra.mxu1 %v199_v21 }
  0x5c   :  { %1940 = vmatpush3.xpose.msra.mxu0 %v91_v22  ;;  %1979 = vmatprep.subr.mxu1 %v198_v23 }
  0x5d   :  { %1941 = vmatprep.subr.mxu0 %v90_v24 }
  0x5f   :  { %1980 = vmatpush3.xpose.msra.mxu1 %v198_v23  ;;  %v1845_v23 = vld [vmem:[%s2713_s6] ss:$0 sm:$0xff]  ;;  %s2215_s6 = smov [#allocation10]  }
  0x60   :  { %1942 = vmatpush3.xpose.msra.mxu0 %v90_v24  ;;  %1981 = vmatprep.subr.mxu1 %v197_v25  ;;  %s1828_s23 = sshll.u32 %s2215_s6, 4  ;;  %s1829_s23 = int_to_ptr.vmem [resolvable:$true] %s1828_s23 }
  0x61   :  { %1943 = vmatprep.subr.mxu0 %v89_v26  ;;  %s2178_s24 = scalar_lea.vmem %s1829_s23, 64  ;;  %p2183_p7 = scmp.lt.s32.totalorder %s1829_s23, %s1829_s23 }
  0x62   :  { %p2179_p6 = scmp.ne.s32.totalorder %s1829_s23, %s2178_s24  ;;  %p2184_p8 = scmp.lt.s32.totalorder %s2178_s24, %s2178_s24 }
  0x63   :  { %1982 = vmatpush3.xpose.msra.mxu1 %v197_v25 }
  0x64   :  { %1944 = vmatpush3.xpose.msra.mxu0 %v89_v26  ;;  %1983 = vmatprep.subr.mxu1 %v196_v27  ;;  %p2185_p9 = por %p2184_p8, %p2183_p7 }
  0x65   :  { %1945 = vmatprep.subr.mxu0 %v88_v28 }
  0x66   :  { %p2186_p10 = pnand %p2185_p9, %p2179_p6 }
  0x67   :  { %1984 = vmatpush3.xpose.msra.mxu1 %v196_v27 }
  0x68   :  { %1946 = vmatpush3.xpose.msra.mxu0 %v88_v28  ;;  %1985 = vmatprep.subr.mxu1 %v195_v29 }
  0x69   :  { %1947 = vmatprep.subr.mxu0 %v87_v30 }
  0x6b   :  { %1986 = vmatpush3.xpose.msra.mxu1 %v195_v29 }
  0x6c   :  { %1948 = vmatpush3.xpose.msra.mxu0 %v87_v30  ;;  %1987 = vmatprep.subr.mxu1 %v194_v31 }
  0x6d   :  { %1949 = vmatprep.subr.mxu0 %v86_v32 }
  0x6f   :  { %1988 = vmatpush3.xpose.msra.mxu1 %v194_v31 }
  0x70   :  { %1950 = vmatpush3.xpose.msra.mxu0 %v86_v32  ;;  %1995 = vmatprep.subr.mxu1 %v2212_v36 }
  0x71   :  { %2035 = vmatprep.subr.mxu0 %v2212_v36 }
  0x72   :  { %1990 = vmatmul.mubr.f32.vlgmr.msra.gmra.mxu1 %v2284_v33 }
  0x73   :  { %1952 = vmatmul.mubr.f32.vlgmr.msra.gmra.mxu0 %v2284_v33  ;;  %1992 = vmatprep.mubr.f32.mxu1 %v2286_v34 }
  0x74   :  { %1954 = vmatprep.mubr.f32.mxu0 %v2286_v34 }
  0x76   :  { %1993 = vmatmul.mubr.f32.gmra.mxu1 %v2291_v35 }
  0x77   :  { %1955 = vmatmul.mubr.f32.gmra.mxu0 %v2291_v35  ;;  %1997 = vmatprep.mubr.msk.f32.mxu1 %vm2213_vm0, %v2212_v36 }
  0x78   :  { %2067 = vmatprep.mubr.msk.f32.mxu0 %vm2213_vm0, %v2212_v36 }
 0x132   :  { %v1991_v37 = vpop.f32.mrf.mxu1 }
 0x133   :  { %v1953_v38 = vpop.f32.mrf.mxu0  ;;  %v289_v46 = vadd.f32 %v1991_v37, %v1840_v39 }
 0x134   :  { %v283_v40 = vpop.f32.mrf.mxu1  ;;  %v181_v49 = vadd.f32 %v1953_v38, %v1839_v42 }
 0x135   :  { %v284_v41 = vadd.f32 %v1840_v39, %v283_v40  ;;  %v175_v43 = vpop.f32.mrf.mxu0 }
 0x136   :  { %v1994_v44 = vpop.f32.mrf.mxu1  ;;  %v176_v45 = vadd.f32 %v1839_v42, %v175_v43 }
 0x137   :  { %1996 = vmatpush3.xpose.msra.mxu1 %v284_v41  ;;  %v1956_v47 = vpop.f32.mrf.mxu0  ;;  %v299_v53 = vadd.f32 %v1994_v44, %v1840_v39 }
 0x138   :  { %2000 = vmatprep.subr.mxu1 %v2212_v36  ;;  %v293_v48 = vpop.f32.mrf.mxu1  ;;  %v191_v54 = vadd.f32 %v1956_v47, %v1839_v42 }
 0x139   :  { %v294_v50 = vadd.f32 %v1840_v39, %v293_v48  ;;  %v185_v51 = vpop.f32.mrf.mxu0 }
 0x13a   :  { %1998 = vmatmul.mubr.f32.vlgmr.msra.gmra.mxu1 %v176_v45  ;;  %v186_v52 = vadd.f32 %v1839_v42, %v185_v51 }
 0x13b   :  { %2001 = vmatpush3.xpose.msra.mxu1 %v289_v46  ;;  %2002 = vmatprep.mubr.msk.f32.mxu1 %vm2213_vm0, %v2212_v36 }
 0x13c   :  { %2005 = vmatprep.subr.mxu1 %v2212_v36 }
 0x13e   :  { %2003 = vmatmul.mubr.f32.vlgmr.msra.gmra.mxu1 %v181_v49 }
 0x13f   :  { %2006 = vmatpush3.xpose.msra.mxu1 %v294_v50  ;;  %2007 = vmatprep.mubr.msk.f32.mxu1 %vm2213_vm0, %v2212_v36 }
 0x140   :  { %2010 = vmatprep.subr.mxu1 %v2212_v36 }
 0x142   :  { %2008 = vmatmul.mubr.f32.vlgmr.msra.gmra.mxu1 %v186_v52 }
 0x143   :  { %2011 = vmatpush3.xpose.msra.mxu1 %v299_v53  ;;  %2012 = vmatprep.mubr.msk.f32.mxu1 %vm2213_vm0, %v2212_v36 }
 0x144   :  { %2015 = vmatprep.subr.mxu1 %v2212_v36 }
 0x146   :  { %2013 = vmatmul.mubr.f32.vlgmr.msra.gmra.mxu1 %v191_v54 }
 0x147   :  { %2016 = vmatpush3.msra.mxu1 %v2280_v8  ;;  %2017 = vmatprep.mubr.msk.f32.mxu1 %vm2213_vm0, %v2212_v36 }
 0x148   :  { %2020 = vmatprep.subr.mxu1 %v2212_v36 }
 0x1fa   :  { %v368_v55 = vpop.f32.mrf.mxu1 }
 0x1fb   :  { %v583_v56 = vsel %vm582_vm1, %v368_v55, -inf }
 0x1fc   :  { %584 = vmax.xlane.f32.xlu0 %v583_v56  ;;  %v1999_v57 = vpop.f32.mrf.mxu1 }
 0x1fe   :  { %v438_v58 = vpop.f32.mrf.mxu1 }
 0x1ff   :  { %v586_v59 = vsel %vm582_vm1, %v438_v58, -inf }
 0x200   :  { %587 = vmax.xlane.f32.xlu0 %v586_v59  ;;  %v2004_v60 = vpop.f32.mrf.mxu1 }
 0x202   :  { %v508_v61 = vpop.f32.mrf.mxu1 }
 0x203   :  { %v589_v62 = vsel %vm582_vm1, %v508_v61, -inf }
 0x204   :  { %590 = vmax.xlane.f32.xlu1 %v589_v62  ;;  %v2009_v63 = vpop.f32.mrf.mxu1 }
 0x206   :  { %v578_v0 = vpop.f32.mrf.mxu1 }
 0x207   :  { %v592_v1 = vsel %vm582_vm1, %v578_v0, -inf }
 0x208   :  { %593 = vmax.xlane.f32.xlu1 %v592_v1  ;;  %v2014_v2 = vpop.f32.mrf.mxu1 }
 0x285   :  { %v585_v3 = vpop.xlane.xlu0 %584 }
 0x286   :  { %v595_v4 = vsub.f32 %v368_v55, %v585_v3 }
 0x288   :  { %v599_v5 = vmul.f32 1.442695, %v595_v4 }
 0x289   :  { %v588_v6 = vpop.xlane.xlu0 %587 }
 0x28a   :  { %2082 = vpow2.f32 %v599_v5  ;;  %v596_v7 = vsub.f32 %v438_v58, %v588_v6 }
 0x28c   :  { %v601_v8 = vmul.f32 1.442695, %v596_v7 }
 0x28d   :  { %v591_v9 = vpop.xlane.xlu1 %590 }
 0x28e   :  { %2084 = vpow2.f32 %v601_v8  ;;  %v597_v10 = vsub.f32 %v508_v61, %v591_v9 }
 0x290   :  { %v603_v11 = vmul.f32 1.442695, %v597_v10 }
 0x291   :  { %v594_v12 = vpop.xlane.xlu1 %593 }
 0x292   :  { %2086 = vpow2.f32 %v603_v11  ;;  %v598_v13 = vsub.f32 %v578_v0, %v594_v12  ;;  %v979_v11 = vld [vmem:[#allocation8 + $0x78] sm:$0xff]  ;;  %v978_v12 = vld [vmem:[#allocation8 + $0x70] sm:$0xff] }
 0x293   :  { %2036 = vmatpush3.xpose.msra.mxu0 %v979_v11 }
 0x294   :  { %v605_v14 = vmul.f32 1.442695, %v598_v13  ;;  %2037 = vmatprep.subr.mxu0 %v2212_v36  ;;  %v976_v13 = vld [vmem:[#allocation8 + $0x60] sm:$0xff] }
 0x296   :  { %2088 = vpow2.f32 %v605_v14  ;;  %v975_v14 = vld [vmem:[#allocation8 + $0x58] sm:$0xff] }
 0x297   :  { %v2083_v15 = vpop.eup %2082  ;;  %2038 = vmatpush3.xpose.msra.mxu0 %v978_v12 }
 0x298   :  { %v607_v16 = vsel %vm582_vm1, %v2083_v15, 0.0  ;;  %2039 = vmatprep.subr.mxu0 %v2212_v36 }
 0x299   :  { %608 = vadd.xlane.f32.xlu0 %v607_v16  ;;  %v973_v16 = vld [vmem:[#allocation8 + $0x48] sm:$0xff] }
 0x29b   :  { %v2085_v17 = vpop.eup %2084 }
 0x29c   :  { %v610_v18 = vsel %vm582_vm1, %v2085_v17, 0.0 }
 0x29d   :  { %611 = vadd.xlane.f32.xlu1 %v610_v18  ;;  %v971_v18 = vld [vmem:[#allocation8 + $0x38] sm:$0xff] }
 0x29f   :  { %v2087_v19 = vpop.eup %2086 }
 0x2a0   :  { %v613_v20 = vsel %vm582_vm1, %v2087_v19, 0.0 }
 0x2a1   :  { %614 = vadd.xlane.f32.xlu0 %v613_v20  ;;  %v969_v20 = vld [vmem:[#allocation8 + $0x28] sm:$0xff] }
 0x2a3   :  { %v2089_v21 = vpop.eup %2088 }
 0x2a4   :  { %v616_v22 = vsel %vm582_vm1, %v2089_v21, 0.0 }
 0x2a5   :  { %617 = vadd.xlane.f32.xlu1 %v616_v22  ;;  %v967_v22 = vld [vmem:[#allocation8 + $0x18] sm:$0xff] }
 0x2b6   :  { %991 = vbcast.lane.b32.xlu1 %v1845_v23, 264 }
 0x2b7   :  { %987 = vbcast.lane.b32.xlu0 %v1845_v23, 256 }
 0x2ba   :  { %995 = vbcast.lane.b32.xlu1 %v1845_v23, 272 }
 0x2bb   :  { %1003 = vbcast.lane.b32.xlu0 %v1845_v23, 288 }
 0x2be   :  { %999 = vbcast.lane.b32.xlu1 %v1845_v23, 280 }
 0x2bf   :  { %1011 = vbcast.lane.b32.xlu0 %v1845_v23, 304 }
 0x2c2   :  { %1007 = vbcast.lane.b32.xlu1 %v1845_v23, 296 }
 0x2c3   :  { %1019 = vbcast.lane.b32.xlu0 %v1845_v23, 320 }
 0x2c6   :  { %1015 = vbcast.lane.b32.xlu1 %v1845_v23, 312 }
 0x2c7   :  { %1027 = vbcast.lane.b32.xlu0 %v1845_v23, 336 }
 0x2ca   :  { %1023 = vbcast.lane.b32.xlu1 %v1845_v23, 328 }
 0x2cb   :  { %1035 = vbcast.lane.b32.xlu0 %v1845_v23, 352 }
 0x2ce   :  { %1031 = vbcast.lane.b32.xlu1 %v1845_v23, 344 }
 0x2cf   :  { %1043 = vbcast.lane.b32.xlu0 %v1845_v23, 368 }
 0x2d2   :  { %1039 = vbcast.lane.b32.xlu1 %v1845_v23, 360 }
 0x2d6   :  { %1047 = vbcast.lane.b32.xlu1 %v1845_v23, 376  ;;  %v966_v23 = vld [vmem:[#allocation8 + $0x10] sm:$0xff] }
 0x322   :  { %v609_v24 = vpop.xlane.xlu0 %608 }
 0x323   :  { %2090 = vrcp.f32 %v609_v24  ;;  %v965_v24 = vld [vmem:[#allocation8 + $0x8] sm:$0xff] }
 0x326   :  { %v612_v25 = vpop.xlane.xlu1 %611 }
 0x327   :  { %2092 = vrcp.f32 %v612_v25  ;;  %v964_v25 = vld [vmem:[#allocation8] sm:$0xff] }
 0x32a   :  { %v615_v26 = vpop.xlane.xlu0 %614 }
 0x32b   :  { %2094 = vrcp.f32 %v615_v26 }
 0x32e   :  { %v618_v27 = vpop.xlane.xlu1 %617  ;;  %v2371_v26 = vpop.permute.xlu0 %987 }
 0x32f   :  { %2096 = vrcp.f32 %v618_v27 }
 0x330   :  { %v2091_v28 = vpop.eup %2090 }
 0x331   :  { %v623_v29 = vmul.f32 %v2091_v28, %v2083_v15  ;;  %v974_v15 = vld [vmem:[#allocation8 + $0x50] sm:$0xff] }
 0x332   :  { %v2373_v27 = vpop.permute.xlu0 %1003 }
 0x333   :  { %v627_v30 = vsel %vm582_vm1, %v623_v29, 0.0 }
 0x334   :  { %v2093_v31 = vpop.eup %2092  ;;  %v628_v32 = vrot.slane %v627_v30, 4 }
 0x335   :  { %v624_v37 = vmul.f32 %v2093_v31, %v2085_v17  ;;  %v972_v17 = vld [vmem:[#allocation8 + $0x40] sm:$0xff] }
 0x336   :  { %v629_v38 = vadd.f32 %v628_v32, %v627_v30  ;;  %v2375_v28 = vpop.permute.xlu0 %1011  ;;  %v2379_v30 = vpop.permute.xlu1 %991 }
 0x337   :  { %v634_v39 = vsel %vm582_vm1, %v624_v37, 0.0 }
 0x338   :  { %v2095_v40 = vpop.eup %2094  ;;  %v635_v41 = vrot.slane %v634_v39, 4  ;;  %v630_v42 = vrot.slane %v629_v38, 2 }
 0x339   :  { %v625_v43 = vmul.f32 %v2095_v40, %v2087_v19  ;;  %v970_v19 = vld [vmem:[#allocation8 + $0x30] sm:$0xff] }
 0x33a   :  { %v631_v44 = vadd.f32 %v630_v42, %v629_v38  ;;  %v636_v45 = vadd.f32 %v635_v41, %v634_v39  ;;  %v2377_v29 = vpop.permute.xlu0 %1019  ;;  %v2383_v32 = vpop.permute.xlu1 %995 }
 0x33b   :  { %v641_v46 = vsel %vm582_vm1, %v625_v43, 0.0 }
 0x33c   :  { %v2097_v47 = vpop.eup %2096  ;;  %v642_v48 = vrot.slane %v641_v46, 4  ;;  %v632_v49 = vrot.slane %v631_v44, 1  ;;  %v637_v50 = vrot.slane %v636_v45, 2 }
 0x33d   :  { %v626_v51 = vmul.f32 %v2097_v47, %v2089_v21  ;;  %v968_v21 = vld [vmem:[#allocation8 + $0x20] sm:$0xff] }
 0x33e   :  { %v633_v52 = vadd.f32 %v632_v49, %v631_v44  ;;  %v638_v53 = vadd.f32 %v637_v50, %v636_v45  ;;  %v643_v54 = vadd.f32 %v642_v48, %v641_v46  ;;  %v2381_v31 = vpop.permute.xlu0 %1027  ;;  %v2387_v38 = vpop.permute.xlu1 %999 }
 0x33f   :  { %v648_v55 = vsel %vm582_vm1, %v626_v51, 0.0 }
 0x340   :  { %v649_v56 = vrot.slane %v648_v55, 4  ;;  %v656_v57 = vmul.f32 0.125, %v633_v52  ;;  %v639_v58 = vrot.slane %v638_v53, 1  ;;  %v644_v59 = vrot.slane %v643_v54, 2 }
 0x342   :  { %2018 = vmatmul.mubr.msk.f32.vlgmr.msra.gmra.mxu1 %vm582_vm1, %v656_v57  ;;  %v660_v60 = vsel %vm582_vm1, %v656_v57, 0.0  ;;  %v640_v61 = vadd.f32 %v639_v58, %v638_v53  ;;  %v645_v62 = vadd.f32 %v644_v59, %v643_v54  ;;  %v650_v63 = vadd.f32 %v649_v56, %v648_v55  ;;  %v2385_v37 = vpop.permute.xlu0 %1035  ;;  %v2391_v39 = vpop.permute.xlu1 %1007 }
 0x343   :  { %661 = vadd.xlane.f32.xlu0 %v660_v60  ;;  %2021 = vmatpush3.msra.mxu1 %v2284_v33 }
 0x344   :  { %2022 = vmatprep.mubr.msk.f32.mxu1 %vm2213_vm0, %v2212_v36  ;;  %v657_v0 = vmul.f32 0.125, %v640_v61  ;;  %2025 = vmatprep.subr.mxu1 %v2212_v36  ;;  %v646_v1 = vrot.slane %v645_v62, 1  ;;  %v651_v2 = vrot.slane %v650_v63, 2 }
 0x346   :  { %2023 = vmatmul.mubr.msk.f32.vlgmr.msra.gmra.mxu1 %vm582_vm1, %v657_v0  ;;  %v663_v3 = vsel %vm582_vm1, %v657_v0, 0.0  ;;  %v647_v4 = vadd.f32 %v646_v1, %v645_v62  ;;  %v652_v5 = vadd.f32 %v651_v2, %v650_v63  ;;  %v2395_v43 = vpop.permute.xlu1 %1015 }
 0x347   :  { %664 = vadd.xlane.f32.xlu1 %v663_v3  ;;  %2026 = vmatpush3.msra.mxu1 %v2286_v34  ;;  %v2214_v34 = vmov 0  }
 0x348   :  { %2027 = vmatprep.mubr.msk.f32.mxu1 %vm2213_vm0, %v2212_v36  ;;  %v658_v33 = vmul.f32 0.125, %v647_v4  ;;  %2030 = vmatprep.subr.mxu1 %v2212_v36  ;;  %v653_v6 = vrot.slane %v652_v5, 1 }
 0x349   :  { %2081 = vset.pattern.permute.xlu1 %v2214_v34  ;;  %2080 = vset.pattern.permute.xlu0 %v2214_v34 }
 0x34a   :  { %2028 = vmatmul.mubr.msk.f32.vlgmr.msra.gmra.mxu1 %vm582_vm1, %v658_v33  ;;  %v666_v7 = vsel %vm582_vm1, %v658_v33, 0.0  ;;  %v654_v8 = vadd.f32 %v653_v6, %v652_v5  ;;  %v2399_v46 = vpop.permute.xlu1 %1023 }
 0x34b   :  { %667 = vadd.xlane.f32.xlu0 %v666_v7  ;;  %2031 = vmatpush3.msra.mxu1 %v2291_v35  ;;  %v977_v35 = vld [vmem:[#allocation8 + $0x68] sm:$0xff] }
 0x34c   :  { %2032 = vmatprep.mubr.msk.f32.mxu1 %vm2213_vm0, %v2212_v36  ;;  %v659_v9 = vmul.f32 0.125, %v654_v8  ;;  %2040 = vmatpush3.xpose.msra.mxu0 %v977_v35  ;;  %vm1487_vm0 = vcmask 851712  }
 0x34d   :  { %2041 = vmatprep.subr.mxu0 %v2212_v36 }
 0x34e   :  { %2033 = vmatmul.mubr.msk.f32.vlgmr.msra.gmra.mxu1 %vm582_vm1, %v659_v9  ;;  %v669_v10 = vsel %vm582_vm1, %v659_v9, 0.0  ;;  %v2405_v51 = vpop.permute.xlu1 %1031  ;;  %vm1494_vm1 = vcmask 917312  }
 0x34f   :  { %670 = vadd.xlane.f32.xlu1 %v669_v10 }
 0x350   :  { %2042 = vmatpush3.xpose.msra.mxu0 %v976_v13 }
 0x351   :  { %2043 = vmatprep.subr.mxu0 %v2212_v36 }
 0x352   :  { %v2409_v54 = vpop.permute.xlu1 %1039 }
 0x354   :  { %2044 = vmatpush3.xpose.msra.mxu0 %v975_v14 }
 0x355   :  { %2045 = vmatprep.subr.mxu0 %v2212_v36 }
 0x356   :  { %v2415_v59 = vpop.permute.xlu1 %1047 }
 0x358   :  { %2046 = vmatpush3.xpose.msra.mxu0 %v974_v15 }
 0x359   :  { %2047 = vmatprep.subr.mxu0 %v2212_v36 }
 0x35c   :  { %2048 = vmatpush3.xpose.msra.mxu0 %v973_v16 }
 0x35d   :  { %2049 = vmatprep.subr.mxu0 %v2212_v36 }
 0x360   :  { %2050 = vmatpush3.xpose.msra.mxu0 %v972_v17 }
 0x361   :  { %2051 = vmatprep.subr.mxu0 %v2212_v36 }
 0x364   :  { %2052 = vmatpush3.xpose.msra.mxu0 %v971_v18 }
 0x365   :  { %2053 = vmatprep.subr.mxu0 %v2212_v36 }
 0x368   :  { %2054 = vmatpush3.xpose.msra.mxu0 %v970_v19 }
 0x369   :  { %2055 = vmatprep.subr.mxu0 %v2212_v36 }
 0x36c   :  { %2056 = vmatpush3.xpose.msra.mxu0 %v969_v20 }
 0x36d   :  { %2057 = vmatprep.subr.mxu0 %v2212_v36 }
 0x370   :  { %2058 = vmatpush3.xpose.msra.mxu0 %v968_v21 }
 0x371   :  { %2059 = vmatprep.subr.mxu0 %v2212_v36 }
 0x374   :  { %2060 = vmatpush3.xpose.msra.mxu0 %v967_v22 }
 0x375   :  { %2061 = vmatprep.subr.mxu0 %v2212_v36 }
 0x378   :  { %2062 = vmatpush3.xpose.msra.mxu0 %v966_v23 }
 0x379   :  { %2063 = vmatprep.subr.mxu0 %v2212_v36 }
 0x37c   :  { %2064 = vmatpush3.xpose.msra.mxu0 %v965_v24 }
 0x37d   :  { %2065 = vmatprep.subr.mxu0 %v2212_v36  ;;  %v2389_v36 = vpop.permute.xlu0 %1043 }
 0x380   :  { %2066 = vmatpush3.xpose.msra.mxu0 %v964_v25 }
 0x3cc   :  { %v662_v40 = vpop.xlane.xlu0 %661 }
 0x3cd   :  { %v1065_v41 = vmul.f32 %v2371_v26, %v662_v40  ;;  %v1066_v42 = vmul.f32 %v2379_v30, %v662_v40  ;;  %v1067_v44 = vmul.f32 %v2383_v32, %v662_v40  ;;  %v1068_v45 = vmul.f32 %v2387_v38, %v662_v40 }
 0x3ce   :  { %v1069_v47 = vmul.f32 %v2373_v27, %v662_v40  ;;  %v1070_v48 = vmul.f32 %v2391_v39, %v662_v40  ;;  %v1071_v49 = vmul.f32 %v2375_v28, %v662_v40  ;;  %v1072_v50 = vmul.f32 %v2395_v43, %v662_v40 }
 0x3cf   :  { %1208 = vperm.xlu0 %2080, %v1065_v41   ;;  %1211 = vperm.xlu1 %2081, %v1066_v42   ;;  %v1073_v52 = vmul.f32 %v2377_v29, %v662_v40  ;;  %v1074_v53 = vmul.f32 %v2399_v46, %v662_v40  ;;  %v1075_v55 = vmul.f32 %v2381_v31, %v662_v40 }
 0x3d0   :  { %v1076_v56 = vmul.f32 %v2405_v51, %v662_v40  ;;  %v1077_v57 = vmul.f32 %v2385_v37, %v662_v40  ;;  %v1078_v58 = vmul.f32 %v2409_v54, %v662_v40  ;;  %v1079_v60 = vmul.f32 %v2389_v36, %v662_v40  ;;  %v665_v62 = vpop.xlane.xlu1 %664 }
 0x3d1   :  { %v1080_v61 = vmul.f32 %v2415_v59, %v662_v40  ;;  %v1082_v63 = vmul.f32 %v2379_v30, %v665_v62  ;;  %v1081_v0 = vmul.f32 %v2371_v26, %v665_v62  ;;  %v1084_v1 = vmul.f32 %v2387_v38, %v665_v62 }
 0x3d2   :  { %v1083_v2 = vmul.f32 %v2383_v32, %v665_v62  ;;  %v1086_v3 = vmul.f32 %v2391_v39, %v665_v62  ;;  %v1085_v4 = vmul.f32 %v2373_v27, %v665_v62  ;;  %v1088_v5 = vmul.f32 %v2395_v43, %v665_v62 }
 0x3d3   :  { %1214 = vperm.xlu1 %2081, %v1067_v44   ;;  %1217 = vperm.xlu0 %2080, %v1068_v45   ;;  %v1087_v33 = vmul.f32 %v2375_v28, %v665_v62  ;;  %v1090_v6 = vmul.f32 %v2399_v46, %v665_v62  ;;  %v1089_v7 = vmul.f32 %v2377_v29, %v665_v62 }
 0x3d4   :  { %v1092_v8 = vmul.f32 %v2405_v51, %v665_v62  ;;  %v1091_v9 = vmul.f32 %v2381_v31, %v665_v62  ;;  %v1094_v11 = vmul.f32 %v2409_v54, %v665_v62  ;;  %v1093_v12 = vmul.f32 %v2385_v37, %v665_v62  ;;  %v2435_v16 = vpop.xlane.xlu0 %667 }
 0x3d5   :  { %v1096_v14 = vmul.f32 %v2415_v59, %v665_v62  ;;  %v1095_v15 = vmul.f32 %v2389_v36, %v665_v62  ;;  %v1098_v21 = vmul.f32 %v2379_v30, %v2435_v16  ;;  %v1097_v22 = vmul.f32 %v2371_v26, %v2435_v16 }
 0x3d6   :  { %v1100_v44 = vmul.f32 %v2387_v38, %v2435_v16  ;;  %v1099_v45 = vmul.f32 %v2383_v32, %v2435_v16 }
 0x3d7   :  { %1220 = vperm.xlu1 %2081, %v1069_v47   ;;  %1223 = vperm.xlu0 %2080, %v1070_v48   ;;  %v1102_v47 = vmul.f32 %v2391_v39, %v2435_v16  ;;  %v1101_v48 = vmul.f32 %v2373_v27, %v2435_v16 }
 0x3db   :  { %1226 = vperm.xlu1 %2081, %v1071_v49   ;;  %1229 = vperm.xlu0 %2080, %v1072_v50   ;;  %v1104_v49 = vmul.f32 %v2395_v43, %v2435_v16  ;;  %v1103_v50 = vmul.f32 %v2375_v28, %v2435_v16 }
 0x3df   :  { %1232 = vperm.xlu1 %2081, %v1073_v52   ;;  %1235 = vperm.xlu0 %2080, %v1074_v53   ;;  %v1106_v52 = vmul.f32 %v2399_v46, %v2435_v16  ;;  %v1105_v53 = vmul.f32 %v2377_v29, %v2435_v16 }
 0x3e3   :  { %1238 = vperm.xlu1 %2081, %v1075_v55   ;;  %1241 = vperm.xlu0 %2080, %v1076_v56   ;;  %v1108_v55 = vmul.f32 %v2405_v51, %v2435_v16  ;;  %v1107_v56 = vmul.f32 %v2381_v31, %v2435_v16 }
 0x3e7   :  { %1244 = vperm.xlu1 %2081, %v1077_v57   ;;  %1247 = vperm.xlu0 %2080, %v1078_v58   ;;  %v671_v57 = vpop.xlane.xlu1 %670  ;;  %v1109_v58 = vmul.f32 %v2385_v37, %v2435_v16 }
 0x3e8   :  { %v1116_v62 = vmul.f32 %v2387_v38, %v671_v57  ;;  %v1123_v38 = vmul.f32 %v2381_v31, %v671_v57 }
 0x3eb   :  { %1250 = vperm.xlu1 %2081, %v1079_v60   ;;  %1253 = vperm.xlu0 %2080, %v1080_v61   ;;  %v1114_v60 = vmul.f32 %v2379_v30, %v671_v57  ;;  %v1110_v61 = vmul.f32 %v2409_v54, %v2435_v16  ;;  %v1113_v30 = vmul.f32 %v2371_v26, %v671_v57 }
 0x3ef   :  { %1259 = vperm.xlu0 %2080, %v1082_v63   ;;  %1256 = vperm.xlu1 %2081, %v1081_v0   ;;  %v1111_v63 = vmul.f32 %v2389_v36, %v2435_v16  ;;  %v1118_v0 = vmul.f32 %v2391_v39, %v671_v57  ;;  %v1399_v39 = vlaneseq }
 0x3f1   :  { %v2481_v26 = vand.u32 127, %v1399_v39  ;;  %v2485_v31 = vshrl.u32 %v1399_v39, 7 }
 0x3f3   :  { %1265 = vperm.xlu0 %2080, %v1084_v1   ;;  %1262 = vperm.xlu1 %2081, %v1083_v2   ;;  %v1120_v1 = vmul.f32 %v2395_v43, %v671_v57  ;;  %v1122_v2 = vmul.f32 %v2399_v46, %v671_v57  ;;  %v1119_v43 = vmul.f32 %v2375_v28, %v671_v57  ;;  %v1419_v28 = vadd.s32 4294967272, %v2481_v26 }
 0x3f4   :  { %v1125_v46 = vmul.f32 %v2385_v37, %v671_v57  ;;  %v2494_v37 = vsub.s32 %v2481_v26, %v2485_v31 }
 0x3f7   :  { %1271 = vperm.xlu0 %2080, %v1086_v3   ;;  %1268 = vperm.xlu1 %2081, %v1085_v4   ;;  %v1115_v3 = vmul.f32 %v2383_v32, %v671_v57  ;;  %v1117_v4 = vmul.f32 %v2373_v27, %v671_v57  ;;  %v1121_v32 = vmul.f32 %v2377_v29, %v671_v57  ;;  %v1405_v27 = vadd.s32 4294967288, %v2481_v26 }
 0x3f9   :  { %v2497_v29 = vsub.s32 %v1405_v27, %v2485_v31 }
 0x3fb   :  { %1277 = vperm.xlu0 %2080, %v1088_v5   ;;  %1274 = vperm.xlu1 %2081, %v1087_v33   ;;  %v1124_v5 = vmul.f32 %v2405_v51, %v671_v57  ;;  %v1126_v33 = vmul.f32 %v2409_v54, %v671_v57  ;;  %v1112_v51 = vmul.f32 %v2415_v59, %v2435_v16  ;;  %v1447_v16 = vadd.s32 4294967240, %v2481_v26 }
 0x3fc   :  { %v1128_v54 = vmul.f32 %v2415_v59, %v671_v57 }
 0x3ff   :  { %1283 = vperm.xlu0 %2080, %v1090_v6   ;;  %1280 = vperm.xlu1 %2081, %v1089_v7   ;;  %v1412_v6 = vadd.s32 4294967280, %v2481_v26  ;;  %v1127_v7 = vmul.f32 %v2389_v36, %v671_v57  ;;  %v1426_v36 = vadd.s32 4294967264, %v2481_v26 }
 0x402   :  { %v741_v34 = vpop.f32.mrf.mxu1 }
 0x403   :  { %1289 = vperm.xlu0 %2080, %v1092_v8   ;;  %1286 = vperm.xlu1 %2081, %v1091_v9  }
 0x404   :  { %v2019_v10 = vpop.f32.mrf.mxu1 }
 0x405   :  { %v1433_v10 = vadd.s32 4294967256, %v2481_v26 }
 0x406   :  { %v814_v35 = vpop.f32.mrf.mxu1 }
 0x407   :  { %1295 = vperm.xlu0 %2080, %v1094_v11   ;;  %1292 = vperm.xlu1 %2081, %v1093_v12   ;;  %v1133_v18 = vrot.slane %v814_v35, 7  ;;  %v2509_v35 = vsub.s32 %v1412_v6, %v2485_v31 }
 0x408   :  { %v2024_v13 = vpop.f32.mrf.mxu1 }
 0x409   :  { %v1135_v24 = vsel %vm1134_vm2, %v1133_v18, %v741_v34  ;;  %v2503_v34 = vsub.s32 %v1419_v28, %v2485_v31  ;;  %v1496_v28 = vadd.s32 4294967184, %v2481_v26 }
 0x40a   :  { %v887_v17 = vpop.f32.mrf.mxu1 }
 0x40b   :  { %1301 = vperm.xlu0 %2080, %v1096_v14   ;;  %1298 = vperm.xlu1 %2081, %v1095_v15   ;;  %v1136_v19 = vrot.slane %v887_v17, 6  ;;  %v2514_v15 = vsub.s32 %v1433_v10, %v2485_v31 }
 0x40c   :  { %v2029_v20 = vpop.f32.mrf.mxu1 }
 0x40d   :  { %v1138_v40 = vsel %vm2716_vm3, %v1136_v19, %v1135_v24  ;;  %v2520_v19 = vsub.s32 %v1426_v36, %v2485_v31  ;;  %v1440_v20 = vadd.s32 4294967248, %v2481_v26  ;;  %vm1508_vm3 = vcmask 1048512  }
 0x40e   :  { %v960_v23 = vpop.f32.mrf.mxu1 }
 0x40f   :  { %v1139_v25 = vrot.slane %v960_v23, 5  ;;  %1307 = vperm.xlu0 %2080, %v1098_v21   ;;  %1304 = vperm.xlu1 %2081, %v1097_v22  }
 0x410   :  { %v2034_v41 = vpop.f32.mrf.mxu1 }
 0x411   :  { %v1141_v42 = vsel %vm2715_vm4, %v1139_v25, %v1138_v40  ;;  %v2526_v25 = vsub.s32 %v1447_v16, %v2485_v31  ;;  %v1461_v40 = vadd.s32 4294967224, %v2481_v26  ;;  %vm1501_vm4 = vcmask 982912  }
 0x412   :  { %2068 = vmatmul.mubr.f32.vlgmr.msra.gmra.mxu0 %v1141_v42 }
 0x413   :  { %1313 = vperm.xlu0 %2080, %v1100_v44   ;;  %1310 = vperm.xlu1 %2081, %v1099_v45   ;;  %v2532_v44 = vsub.s32 %v1440_v20, %v2485_v31  ;;  %v1454_v45 = vadd.s32 4294967232, %v2481_v26 }
 0x415   :  { %v2544_v57 = vsub.s32 %v1454_v45, %v2485_v31 }
 0x417   :  { %1319 = vperm.xlu0 %2080, %v1102_v47   ;;  %1316 = vperm.xlu1 %2081, %v1101_v48  }
 0x41b   :  { %1325 = vperm.xlu0 %2080, %v1104_v49   ;;  %1322 = vperm.xlu1 %2081, %v1103_v50  }
 0x41f   :  { %1331 = vperm.xlu0 %2080, %v1106_v52   ;;  %1328 = vperm.xlu1 %2081, %v1105_v53   ;;  %v2538_v52 = vsub.s32 %v1461_v40, %v2485_v31  ;;  %v1475_v53 = vadd.s32 4294967208, %v2481_v26 }
 0x423   :  { %1337 = vperm.xlu0 %2080, %v1108_v55   ;;  %1334 = vperm.xlu1 %2081, %v1107_v56  }
 0x427   :  { %1340 = vperm.xlu0 %2080, %v1109_v58   ;;  %1355 = vperm.xlu1 %2081, %v1114_v60   ;;  %v1468_v58 = vadd.s32 4294967216, %v2481_v26 }
 0x42b   :  { %1343 = vperm.xlu0 %2080, %v1110_v61   ;;  %1361 = vperm.xlu1 %2081, %v1116_v62  }
 0x42f   :  { %1346 = vperm.xlu0 %2080, %v1111_v63   ;;  %1367 = vperm.xlu1 %2081, %v1118_v0   ;;  %v2550_v0 = vsub.s32 %v1475_v53, %v2485_v31 }
 0x433   :  { %1373 = vperm.xlu1 %2081, %v1120_v1   ;;  %1352 = vperm.xlu0 %2080, %v1113_v30   ;;  %v1489_v1 = vadd.s32 4294967192, %v2481_v26 }
 0x437   :  { %1379 = vperm.xlu1 %2081, %v1122_v2   ;;  %1358 = vperm.xlu0 %2080, %v1115_v3   ;;  %v2556_v3 = vsub.s32 %v1468_v58, %v2485_v31 }
 0x43b   :  { %1382 = vperm.xlu1 %2081, %v1123_v38   ;;  %1364 = vperm.xlu0 %2080, %v1117_v4   ;;  %v1482_v38 = vadd.s32 4294967200, %v2481_v26 }
 0x43f   :  { %1385 = vperm.xlu1 %2081, %v1124_v5   ;;  %1370 = vperm.xlu0 %2080, %v1119_v43  }
 0x443   :  { %1388 = vperm.xlu1 %2081, %v1125_v46   ;;  %1376 = vperm.xlu0 %2080, %v1121_v32   ;;  %v2562_v46 = vsub.s32 %v1489_v1, %v2485_v31  ;;  %v1503_v32 = vadd.s32 4294967176, %v2481_v26 }
 0x447   :  { %1391 = vperm.xlu1 %2081, %v1126_v33   ;;  %1349 = vperm.xlu0 %2080, %v1112_v51   ;;  %v2568_v51 = vsub.s32 %v1482_v38, %v2485_v31 }
 0x44a   :  { %v1209_v8 = vpop.permute.xlu0 %1208  ;;  %v1212_v9 = vpop.permute.xlu1 %1211 }
 0x44b   :  { %v1404_v11 = vrot.slane %v1209_v8, %v2494_v37  ;;  %v1409_v12 = vrot.slane %v1212_v9, %v2497_v29  ;;  %1394 = vperm.xlu1 %2081, %v1127_v7   ;;  %1397 = vperm.xlu0 %2080, %v1128_v54   ;;  %v2574_v9 = vsub.s32 %v1503_v32, %v2485_v31 }
 0x44d   :  { %v1411_v59 = vsel %vm1410_vm5, %v1409_v12, %v1404_v11  ;;  %v2579_v12 = vsub.s32 %v1496_v28, %v2485_v31 }
 0x44e   :  { %v1218_v13 = vpop.permute.xlu0 %1217  ;;  %v1215_v14 = vpop.permute.xlu1 %1214 }
 0x44f   :  { %v1423_v17 = vrot.slane %v1218_v13, %v2503_v34  ;;  %v1416_v18 = vrot.slane %v1215_v14, %v2509_v35 }
 0x451   :  { %v1418_v21 = vsel %vm1417_vm6, %v1416_v18, %v1411_v59 }
 0x452   :  { %v1224_v22 = vpop.permute.xlu0 %1223  ;;  %v1425_v23 = vsel %vm1424_vm7, %v1423_v17, %v1418_v21  ;;  %v1221_v24 = vpop.permute.xlu1 %1220 }
 0x453   :  { %v1437_v41 = vrot.slane %v1224_v22, %v2514_v15  ;;  %v1430_v42 = vrot.slane %v1221_v24, %v2520_v19 }
 0x455   :  { %v1432_v47 = vsel %vm1431_vm8, %v1430_v42, %v1425_v23 }
 0x456   :  { %v1230_v48 = vpop.permute.xlu0 %1229  ;;  %v1439_v49 = vsel %vm1438_vm9, %v1437_v41, %v1432_v47  ;;  %v1227_v50 = vpop.permute.xlu1 %1226 }
 0x457   :  { %v1451_v55 = vrot.slane %v1230_v48, %v2526_v25  ;;  %v1444_v56 = vrot.slane %v1227_v50, %v2532_v44 }
 0x459   :  { %v1446_v60 = vsel %vm1445_vm10, %v1444_v56, %v1439_v49 }
 0x45a   :  { %v1236_v61 = vpop.permute.xlu0 %1235  ;;  %v1453_v62 = vsel %vm1452_vm11, %v1451_v55, %v1446_v60  ;;  %v1233_v63 = vpop.permute.xlu1 %1232 }
 0x45b   :  { %v1465_v30 = vrot.slane %v1236_v61, %v2538_v52  ;;  %v1458_v2 = vrot.slane %v1233_v63, %v2544_v57 }
 0x45d   :  { %v1460_v4 = vsel %vm1459_vm12, %v1458_v2, %v1453_v62 }
 0x45e   :  { %v1242_v39 = vpop.permute.xlu0 %1241  ;;  %v1467_v5 = vsel %vm1466_vm13, %v1465_v30, %v1460_v4  ;;  %v1239_v43 = vpop.permute.xlu1 %1238 }
 0x45f   :  { %v1479_v27 = vrot.slane %v1242_v39, %v2550_v0  ;;  %v1472_v33 = vrot.slane %v1239_v43, %v2556_v3 }
 0x461   :  { %v1474_v6 = vsel %vm1473_vm14, %v1472_v33, %v1467_v5 }
 0x462   :  { %v1248_v7 = vpop.permute.xlu0 %1247  ;;  %v1481_v54 = vsel %vm1480_vm15, %v1479_v27, %v1474_v6  ;;  %v1245_v8 = vpop.permute.xlu1 %1244 }
 0x463   :  { %v1493_v10 = vrot.slane %v1248_v7, %v2562_v46  ;;  %v1486_v11 = vrot.slane %v1245_v8, %v2568_v51 }
 0x465   :  { %v1488_v26 = vsel %vm1487_vm0, %v1486_v11, %v1481_v54 }
 0x466   :  { %v1254_v36 = vpop.permute.xlu0 %1253  ;;  %v1495_v59 = vsel %vm1494_vm1, %v1493_v10, %v1488_v26  ;;  %v1251_v13 = vpop.permute.xlu1 %1250 }
 0x467   :  { %v1507_v14 = vrot.slane %v1254_v36, %v2574_v9  ;;  %v1500_v16 = vrot.slane %v1251_v13, %v2579_v12 }
 0x469   :  { %v1502_v17 = vsel %vm1501_vm4, %v1500_v16, %v1495_v59 }
 0x46a   :  { %v1509_v18 = vsel %vm1508_vm3, %v1507_v14, %v1502_v17  ;;  %v1260_v20 = vpop.permute.xlu0 %1259  ;;  %v1257_v21 = vpop.permute.xlu1 %1256 }
 0x46b   :  { %v1517_v31 = vrot.slane %v1260_v20, %v2497_v29  ;;  %v1513_v22 = vrot.slane %v1257_v21, %v2494_v37 }
 0x46d   :  { %v1518_v23 = vsel %vm1410_vm5, %v1517_v31, %v1513_v22 }
 0x46e   :  { %v1266_v24 = vpop.permute.xlu0 %1265  ;;  %v1263_v40 = vpop.permute.xlu1 %1262 }
 0x46f   :  { %v1527_v41 = vrot.slane %v1266_v24, %v2503_v34  ;;  %v1522_v42 = vrot.slane %v1263_v40, %v2509_v35 }
 0x471   :  { %v1523_v45 = vsel %vm1417_vm6, %v1522_v42, %v1518_v23 }
 0x472   :  { %v1272_v47 = vpop.permute.xlu0 %1271  ;;  %v1528_v48 = vsel %vm1424_vm7, %v1527_v41, %v1523_v45  ;;  %v1269_v49 = vpop.permute.xlu1 %1268 }
 0x473   :  { %v1537_v50 = vrot.slane %v1272_v47, %v2514_v15  ;;  %v1532_v53 = vrot.slane %v1269_v49, %v2520_v19 }
 0x475   :  { %v1533_v55 = vsel %vm1431_vm8, %v1532_v53, %v1528_v48 }
 0x476   :  { %v1278_v56 = vpop.permute.xlu0 %1277  ;;  %v1538_v58 = vsel %vm1438_vm9, %v1537_v50, %v1533_v55  ;;  %v1275_v60 = vpop.permute.xlu1 %1274 }
 0x477   :  { %v1547_v61 = vrot.slane %v1278_v56, %v2526_v25  ;;  %v1542_v62 = vrot.slane %v1275_v60, %v2532_v44 }
 0x479   :  { %v1543_v63 = vsel %vm1445_vm10, %v1542_v62, %v1538_v58 }
 0x47a   :  { %v1284_v1 = vpop.permute.xlu0 %1283  ;;  %v1548_v30 = vsel %vm1452_vm11, %v1547_v61, %v1543_v63  ;;  %v1281_v2 = vpop.permute.xlu1 %1280 }
 0x47b   :  { %v1557_v38 = vrot.slane %v1284_v1, %v2538_v52  ;;  %v1552_v4 = vrot.slane %v1281_v2, %v2544_v57 }
 0x47d   :  { %v1553_v39 = vsel %vm1459_vm12, %v1552_v4, %v1548_v30 }
 0x47e   :  { %v1290_v5 = vpop.permute.xlu0 %1289  ;;  %v1558_v43 = vsel %vm1466_vm13, %v1557_v38, %v1553_v39  ;;  %v1287_v32 = vpop.permute.xlu1 %1286 }
 0x47f   :  { %v1567_v27 = vrot.slane %v1290_v5, %v2550_v0  ;;  %v1562_v33 = vrot.slane %v1287_v32, %v2556_v3 }
 0x481   :  { %v1563_v28 = vsel %vm1473_vm14, %v1562_v33, %v1558_v43 }
 0x482   :  { %v1296_v6 = vpop.permute.xlu0 %1295  ;;  %v1568_v7 = vsel %vm1480_vm15, %v1567_v27, %v1563_v28  ;;  %v1293_v54 = vpop.permute.xlu1 %1292 }
 0x483   :  { %v1577_v8 = vrot.slane %v1296_v6, %v2562_v46  ;;  %v1572_v10 = vrot.slane %v1293_v54, %v2568_v51 }
 0x485   :  { %v1573_v11 = vsel %vm1487_vm0, %v1572_v10, %v1568_v7 }
 0x486   :  { %v1302_v26 = vpop.permute.xlu0 %1301  ;;  %v1578_v36 = vsel %vm1494_vm1, %v1577_v8, %v1573_v11  ;;  %v1299_v59 = vpop.permute.xlu1 %1298 }
 0x487   :  { %v1587_v13 = vrot.slane %v1302_v26, %v2574_v9  ;;  %v1582_v14 = vrot.slane %v1299_v59, %v2579_v12 }
 0x489   :  { %v1583_v16 = vsel %vm1501_vm4, %v1582_v14, %v1578_v36 }
 0x48a   :  { %v1588_v17 = vsel %vm1508_vm3, %v1587_v13, %v1583_v16  ;;  %v1308_v20 = vpop.permute.xlu0 %1307  ;;  %v1305_v21 = vpop.permute.xlu1 %1304 }
 0x48b   :  { %v2619_v31 = vsel %vm1134_vm2, %v1588_v17, %v1509_v18  ;;  %v1596_v63 = vrot.slane %v1308_v20, %v2497_v29  ;;  %v1592_v1 = vrot.slane %v1305_v21, %v2494_v37  ;;  %vm2717_vm2 = vcmask 1042434  }
 0x48d   :  { %v1597_v32 = vsel %vm1410_vm5, %v1596_v63, %v1592_v1 }
 0x48e   :  { %v1314_v22 = vpop.permute.xlu0 %1313  ;;  %v1311_v23 = vpop.permute.xlu1 %1310 }
 0x48f   :  { %v1601_v4 = vrot.slane %v1311_v23, %v2509_v35  ;;  %v1606_v27 = vrot.slane %v1314_v22, %v2503_v34 }
 0x492   :  { %v1320_v24 = vpop.permute.xlu0 %1319  ;;  %v1317_v40 = vpop.permute.xlu1 %1316 }
 0x493   :  { %v1611_v6 = vrot.slane %v1317_v40, %v2520_v19  ;;  %v1616_v8 = vrot.slane %v1320_v24, %v2514_v15 }
 0x496   :  { %v1326_v41 = vpop.permute.xlu0 %1325  ;;  %v1323_v42 = vpop.permute.xlu1 %1322 }
 0x497   :  { %v1621_v59 = vrot.slane %v1323_v42, %v2532_v44  ;;  %v1626_v16 = vrot.slane %v1326_v41, %v2526_v25 }
 0x49a   :  { %v2621_v45 = vpop.permute.xlu0 %1331  ;;  %v1329_v47 = vpop.permute.xlu1 %1328 }
 0x49b   :  { %v1631_v23 = vrot.slane %v1329_v47, %v2544_v57 }
 0x49e   :  { %v2623_v48 = vpop.permute.xlu0 %1337  ;;  %v2625_v49 = vpop.permute.xlu1 %1334 }
 0x4a2   :  { %v2627_v50 = vpop.permute.xlu0 %1340  ;;  %v1356_v53 = vpop.permute.xlu1 %1355 }
 0x4a3   :  { %v1675_v30 = vrot.slane %v1356_v53, %v2497_v29  ;;  %v1602_v29 = vsel %vm1417_vm6, %v1601_v4, %v1597_v32  ;;  %v1636_v53 = vrot.slane %v2621_v45, %v2538_v52 }
 0x4a4   :  { %v1607_v10 = vsel %vm1424_vm7, %v1606_v27, %v1602_v29 }
 0x4a5   :  { %v1612_v36 = vsel %vm1431_vm8, %v1611_v6, %v1607_v10 }
 0x4a6   :  { %v2629_v55 = vpop.permute.xlu0 %1343  ;;  %v1362_v18 = vpop.permute.xlu1 %1361  ;;  %v1617_v17 = vsel %vm1438_vm9, %v1616_v8, %v1612_v36 }
 0x4a7   :  { %v1685_v33 = vrot.slane %v1362_v18, %v2503_v34  ;;  %v1622_v22 = vsel %vm1445_vm10, %v1621_v59, %v1617_v17 }
 0x4aa   :  { %v2631_v56 = vpop.permute.xlu0 %1346  ;;  %v1368_v58 = vpop.permute.xlu1 %1367 }
 0x4ab   :  { %v1695_v11 = vrot.slane %v1368_v58, %v2514_v15 }
 0x4ae   :  { %v1353_v60 = vpop.permute.xlu0 %1352  ;;  %v1374_v61 = vpop.permute.xlu1 %1373 }
 0x4af   :  { %v1671_v62 = vrot.slane %v1353_v60, %v2494_v37  ;;  %v1705_v20 = vrot.slane %v1374_v61, %v2526_v25  ;;  %v1627_v25 = vsel %vm1452_vm11, %v1626_v16, %v1622_v22 }
 0x4b0   :  { %v1632_v47 = vsel %vm1459_vm12, %v1631_v23, %v1627_v25 }
 0x4b1   :  { %v1676_v5 = vsel %vm1410_vm5, %v1675_v30, %v1671_v62  ;;  %v1637_v45 = vsel %vm1466_vm13, %v1636_v53, %v1632_v47  ;;  %vm2718_vm5 = vcmask 1043459  }
 0x4b2   :  { %v1359_v2 = vpop.permute.xlu0 %1358  ;;  %v1380_v38 = vpop.permute.xlu1 %1379 }
 0x4b3   :  { %v1680_v39 = vrot.slane %v1359_v2, %v2509_v35 }
 0x4b5   :  { %v1681_v43 = vsel %vm1417_vm6, %v1680_v39, %v1676_v5 }
 0x4b6   :  { %v1365_v28 = vpop.permute.xlu0 %1364  ;;  %v1383_v37 = vpop.permute.xlu1 %1382  ;;  %v1686_v35 = vsel %vm1424_vm7, %v1685_v33, %v1681_v43 }
 0x4b7   :  { %v1690_v7 = vrot.slane %v1365_v28, %v2520_v19  ;;  %v1720_v42 = vrot.slane %v1383_v37, %v2556_v3 }
 0x4b9   :  { %v1691_v54 = vsel %vm1431_vm8, %v1690_v7, %v1686_v35 }
 0x4ba   :  { %v1371_v26 = vpop.permute.xlu0 %1370  ;;  %v1386_v34 = vpop.permute.xlu1 %1385  ;;  %v1696_v19 = vsel %vm1438_vm9, %v1695_v11, %v1691_v54 }
 0x4bb   :  { %v1700_v13 = vrot.slane %v1371_v26, %v2532_v44  ;;  %v1715_v44 = vrot.slane %v1380_v38, %v2538_v52  ;;  %v1725_v61 = vrot.slane %v1386_v34, %v2550_v0  ;;  %v1646_v52 = vrot.slane %v2623_v48, %v2550_v0 }
 0x4bc   :  { %v1651_v38 = vrot.slane %v2627_v50, %v2568_v51  ;;  %v1661_v48 = vrot.slane %v2631_v56, %v2579_v12 }
 0x4bd   :  { %v1701_v14 = vsel %vm1445_vm10, %v1700_v13, %v1696_v19 }
 0x4be   :  { %v1377_v21 = vpop.permute.xlu0 %1376  ;;  %v1389_v15 = vpop.permute.xlu1 %1388  ;;  %v1706_v40 = vsel %vm1452_vm11, %v1705_v20, %v1701_v14 }
 0x4bf   :  { %v1710_v24 = vrot.slane %v1377_v21, %v2544_v57  ;;  %v1641_v57 = vrot.slane %v2625_v49, %v2556_v3  ;;  %v1730_v1 = vrot.slane %v1389_v15, %v2568_v51  ;;  %v1656_v49 = vrot.slane %v2629_v55, %v2562_v46 }
 0x4c1   :  { %v1711_v41 = vsel %vm1459_vm12, %v1710_v24, %v1706_v40  ;;  %v1642_v2 = vsel %vm1473_vm14, %v1641_v57, %v1637_v45 }
 0x4c2   :  { %v1716_v18 = vsel %vm1466_vm13, %v1715_v44, %v1711_v41  ;;  %v1350_v58 = vpop.permute.xlu0 %1349  ;;  %v1392_v60 = vpop.permute.xlu1 %1391  ;;  %v1647_v5 = vsel %vm1480_vm15, %v1646_v52, %v1642_v2 }
 0x4c3   :  { %v1721_v62 = vsel %vm1473_vm14, %v1720_v42, %v1716_v18  ;;  %v1735_v3 = vrot.slane %v1392_v60, %v2562_v46  ;;  %v1666_v43 = vrot.slane %v1350_v58, %v2574_v9  ;;  %v1652_v32 = vsel %vm1487_vm0, %v1651_v38, %v1647_v5 }
 0x4c4   :  { %v1726_v63 = vsel %vm1480_vm15, %v1725_v61, %v1721_v62  ;;  %v1657_v46 = vsel %vm1494_vm1, %v1656_v49, %v1652_v32 }
 0x4c5   :  { %v1731_v4 = vsel %vm1487_vm0, %v1730_v1, %v1726_v63  ;;  %v1662_v27 = vsel %vm1501_vm4, %v1661_v48, %v1657_v46 }
 0x4c6   :  { %v1395_v30 = vpop.permute.xlu1 %1394  ;;  %v1398_v39 = vpop.permute.xlu0 %1397  ;;  %v1736_v51 = vsel %vm1494_vm1, %v1735_v3, %v1731_v4  ;;  %v1667_v33 = vsel %vm1508_vm3, %v1666_v43, %v1662_v27 }
 0x4c7   :  { %v1740_v0 = vrot.slane %v1395_v30, %v2579_v12  ;;  %v1745_v50 = vrot.slane %v1398_v39, %v2574_v9  ;;  %v1748_v56 = vsel %vm2717_vm2, %v1667_v33, %v2619_v31 }
 0x4c9   :  { %v1741_v55 = vsel %vm1501_vm4, %v1740_v0, %v1736_v51 }
 0x4ca   :  { %v1746_v12 = vsel %vm1508_vm3, %v1745_v50, %v1741_v55 }
 0x4cb   :  { %v1749_v28 = vsel %vm2718_vm5, %v1746_v12, %v1748_v56 }
 0x4d2   :  { %v1817_v37 = vpop.f32.mrf.mxu0 }
 0x4d3   :  { %v1818_v29 = vadd.f32 %v1817_v37, %v1749_v28 }
 0x4d4   :  { %v2069_v9 = vpop.f32.mrf.mxu0 }
 0x4d5   :  { %1821 = vst [vmem:[#allocation10] sm:$0xf] %v1818_v29 }
 0x4d6   :  { %2189 = shalt.err (!%p2186_p10)
}
 0x4d7   :  { %1831 = dma.vmem_to_hbm [thread:$0]  %s1829_s23, 64, %s2714_s7, [#allocation4]  }
 0x4d8   :  { %2204 = dma.done.wait [#allocation4], 64  }
 0x4d9   :  { %2205 = vsyncadd [#allocation4], 4294967232 }
 0x4da   :  { %1835 = vsyncpa [#allocation3], 1 }
 0x4db   :  { %1836 = vsyncpa [#allocation6], 1 }
 0x4dc   :  { %1837 = vsyncpa [#allocation9], 1 }
 0x4dd   :  { %1838 = vsyncpa [#allocation4], 1 }

</bundles_post_ra>
